<compile_context>
chip_gen: v6e
topology: v6e:2x2x1
jax: 0.10.0
libtpu: 0.0.40
codegen_flags: <defaults>
</compile_context>

<pallas_src>
import functools
import math

import jax
import jax.numpy as jnp
from jax.experimental import pallas as pl
from jax.experimental.pallas import tpu as pltpu

NEG_SLOPE = 0.01  # PyTorch nn.LeakyReLU default


def _leaky_relu(x):
    return jnp.where(x >= 0, x, NEG_SLOPE * x)


def mlp_kernel(x_ref, w1_ref, b1_ref, w2_ref, b2_ref, w3_ref, b3_ref, o_ref):
    # x_ref: (TB, K_pad) bf16 tile; weights bf16 (VMEM-resident); biases f32.
    x = x_ref[...]  # already bf16

    h1 = jnp.dot(x, w1_ref[...], preferred_element_type=jnp.float32) + b1_ref[...]
    h1 = _leaky_relu(h1)  # f32 on the VPU

    h2 = jnp.dot(h1.astype(jnp.bfloat16), w2_ref[...],
                 preferred_element_type=jnp.float32) + b2_ref[...]
    h2 = _leaky_relu(h2)

    out = jnp.dot(h2.astype(jnp.bfloat16), w3_ref[...],
                  preferred_element_type=jnp.float32) + b3_ref[...]
    o_ref[...] = out.astype(o_ref.dtype)


def _pad2(a, target_shape):
    pads = [(0, t - s) for s, t in zip(a.shape, target_shape)]
    if all(p == (0, 0) for p in pads):
        return a
    return jnp.pad(a, pads)


def _round_up(x, m):
    return ((x + m - 1) // m) * m


@functools.partial(jax.jit, static_argnames=("block_b",))
def mlp_forward(x, params, block_b=512):
    w1, b1, w2, b2, w3, b3 = params
    B, in_dim = x.shape
    H1 = w1.shape[1]
    H2 = w2.shape[1]
    out_dim = w3.shape[1]

    # MXU-friendly contraction dim, lane-dense output dim.
    K_pad = _round_up(max(in_dim, 128), 128)
    N_pad = _round_up(max(out_dim, 128), 128)
    # Hidden dims (128) are already (8,128)-aligned.

    # Batch tile: sublane-aligned, capped so streamed tiles stay small vs VMEM.
    TB = min(block_b, _round_up(B, 8))
    B_pad = _round_up(B, TB)

    # Pad + cast. bf16 matmul inputs; biases / accum / activations stay f32.
    xp = _pad2(x, (B_pad, K_pad)).astype(jnp.bfloat16)
    w1p = _pad2(w1, (K_pad, H1)).astype(jnp.bfloat16)
    w2p = w2.astype(jnp.bfloat16)
    w3p = _pad2(w3, (H2, N_pad)).astype(jnp.bfloat16)
    b1p = b1.astype(jnp.float32)
    b2p = b2.astype(jnp.float32)
    b3p = _pad2(b3, (1, N_pad)).astype(jnp.float32)

    grid = (B_pad // TB,)

    flops = 2 * B_pad * (K_pad * H1 + H1 * H2 + H2 * N_pad)
    bytes_accessed = (
        xp.size * 2 + w1p.size * 2 + w2p.size * 2 + w3p.size * 2
        + b1p.size * 4 + b2p.size * 4 + b3p.size * 4
        + B_pad * N_pad * 4
    )

    out_padded = pl.pallas_call(
        mlp_kernel,
        out_shape=jax.ShapeDtypeStruct((B_pad, N_pad), jnp.float32),
        grid=grid,
        in_specs=[
            pl.BlockSpec((TB, K_pad), lambda i: (i, 0)),   # x: streamed row tiles
            pl.BlockSpec((K_pad, H1), lambda i: (0, 0)),   # w1: VMEM-resident
            pl.BlockSpec((1, H1),     lambda i: (0, 0)),   # b1
            pl.BlockSpec((H1, H2),    lambda i: (0, 0)),   # w2
            pl.BlockSpec((1, H2),     lambda i: (0, 0)),   # b2
            pl.BlockSpec((H2, N_pad), lambda i: (0, 0)),   # w3
            pl.BlockSpec((1, N_pad),  lambda i: (0, 0)),   # b3
        ],
        out_specs=pl.BlockSpec((TB, N_pad), lambda i: (i, 0)),
        compiler_params=pltpu.CompilerParams(
            dimension_semantics=("parallel",),             # megacore on v7x
            vmem_limit_bytes=32 * 1024 * 1024,             # safe on v5e/v6e/v7x
        ),
        cost_estimate=pl.CostEstimate(
            flops=flops, transcendentals=0, bytes_accessed=bytes_accessed),
    )(xp, w1p, b1p, w2p, b2p, w3p, b3p)

    # Slice off batch / output-column padding.
    return out_padded[:B, :out_dim]


def init_linear(key, in_dim, out_dim):
    # Mimic PyTorch nn.Linear default init: U(-1/sqrt(fan_in), 1/sqrt(fan_in)).
    kw, kb = jax.random.split(key)
    bound = 1.0 / math.sqrt(in_dim)
    w = jax.random.uniform(kw, (in_dim, out_dim), jnp.float32, -bound, bound)
    b = jax.random.uniform(kb, (1, out_dim), jnp.float32, -bound, bound)
    return w, b


def init_mlp(key, input_dim, output_dim, hidden=(128, 128)):
    k1, k2, k3 = jax.random.split(key, 3)
    w1, b1 = init_linear(k1, input_dim, hidden[0])
    w2, b2 = init_linear(k2, hidden[0], hidden[1])
    w3, b3 = init_linear(k3, hidden[1], output_dim)
    return (w1, b1, w2, b2, w3, b3)


def mlp_ref_f32(x, params):
    w1, b1, w2, b2, w3, b3 = params
    h = _leaky_relu(x @ w1 + b1)
    h = _leaky_relu(h @ w2 + b2)
    return h @ w3 + b3


def mlp_ref_bf16_inputs(x, params):
    # Mirrors the kernel's dtype strategy: bf16 matmul inputs, f32 accumulate/bias/act.
    w1, b1, w2, b2, w3, b3 = params
    c = lambda a: a.astype(jnp.bfloat16).astype(jnp.float32)
    h = _leaky_relu(c(x) @ c(w1) + b1)
    h = _leaky_relu(c(h) @ c(w2) + b2)
    return c(h) @ c(w3) + b3


if __name__ == "__main__":
    key = jax.random.PRNGKey(0)
    k_param, k_x = jax.random.split(key)

    batch, input_dim, output_dim = 8, 32, 4
    params = init_mlp(k_param, input_dim, output_dim)
    x = jax.random.normal(k_x, (batch, input_dim), jnp.float32)

    out = mlp_forward(x, params)
    out = jax.block_until_ready(out)

    assert out.shape == (batch, output_dim)

    # Tight check against a reference with the same bf16-input quantization.
    ref_q = mlp_ref_bf16_inputs(x, params)
    assert jnp.allclose(out, ref_q, atol=2e-3, rtol=2e-3)

    # Loose check against the pure-f32 reference (bf16 quantization error only).
    ref_f = mlp_ref_f32(x, params)
    assert jnp.allclose(out, ref_f, atol=5e-2, rtol=5e-2)

    print("KERNEL_OK")
</pallas_src>

<mosaic_0001>
module attributes {stable_mosaic.version = 11 : i64} {
  func.func @mlp_kernel(%arg0: i32, %arg1: memref<8x128xbf16, #tpu.memory_space<vmem>>, %arg2: memref<128x128xbf16, #tpu.memory_space<vmem>>, %arg3: memref<1x128xf32, #tpu.memory_space<vmem>>, %arg4: memref<128x128xbf16, #tpu.memory_space<vmem>>, %arg5: memref<1x128xf32, #tpu.memory_space<vmem>>, %arg6: memref<128x128xbf16, #tpu.memory_space<vmem>>, %arg7: memref<1x128xf32, #tpu.memory_space<vmem>>, %arg8: memref<8x128xf32, #tpu.memory_space<vmem>>) attributes {dimension_semantics = [#tpu.dimension_semantics<parallel>], iteration_bounds = array<i64: 1>, scalar_prefetch = 0 : i64, scratch_operands = 0 : i64, tpu.core_type = #tpu.core_type<tc>, window_params = [{transform_indices = @transform_0, window_bounds = array<i64: 8, 128>}, {pipeline_mode = #tpu.pipeline_mode<synchronous>, transform_indices = @transform_1, window_bounds = array<i64: 128, 128>}, {pipeline_mode = #tpu.pipeline_mode<synchronous>, transform_indices = @transform_2, window_bounds = array<i64: 1, 128>}, {pipeline_mode = #tpu.pipeline_mode<synchronous>, transform_indices = @transform_3, window_bounds = array<i64: 128, 128>}, {pipeline_mode = #tpu.pipeline_mode<synchronous>, transform_indices = @transform_4, window_bounds = array<i64: 1, 128>}, {pipeline_mode = #tpu.pipeline_mode<synchronous>, transform_indices = @transform_5, window_bounds = array<i64: 128, 128>}, {pipeline_mode = #tpu.pipeline_mode<synchronous>, transform_indices = @transform_6, window_bounds = array<i64: 1, 128>}, {transform_indices = @transform_7, window_bounds = array<i64: 8, 128>}]} {
    %c0 = arith.constant 0 : index
    %c0_0 = arith.constant 0 : index
    %0 = vector.load %arg1[%c0, %c0_0] : memref<8x128xbf16, #tpu.memory_space<vmem>>, vector<8x128xbf16>
    %c0_1 = arith.constant 0 : index
    %c0_2 = arith.constant 0 : index
    %1 = vector.load %arg2[%c0_1, %c0_2] : memref<128x128xbf16, #tpu.memory_space<vmem>>, vector<128x128xbf16>
    %cst = arith.constant dense<0.000000e+00> : vector<8x128xf32>
    %2 = tpu.matmul %0, %1, %cst {dimension_numbers = #tpu.dot_dimension_numbers<[1], [0], [0], [1], [0, 0, 1, 1], [], []>} : vector<8x128xbf16>, vector<128x128xbf16>, vector<8x128xf32> -> vector<8x128xf32>
    %c0_3 = arith.constant 0 : index
    %c0_4 = arith.constant 0 : index
    %3 = vector.load %arg3[%c0_3, %c0_4] : memref<1x128xf32, #tpu.memory_space<vmem>>, vector<1x128xf32>
    %4 = vector.broadcast %3 : vector<1x128xf32> to vector<8x128xf32>
    %5 = arith.addf %2, %4 : vector<8x128xf32>
    %cst_5 = arith.constant 0.000000e+00 : f32
    %6 = vector.broadcast %cst_5 : f32 to vector<8x128xf32>
    %7 = arith.cmpf oge, %5, %6 : vector<8x128xf32>
    %cst_6 = arith.constant 0.00999999977 : f32
    %8 = vector.broadcast %cst_6 : f32 to vector<8x128xf32>
    %9 = arith.mulf %8, %5 : vector<8x128xf32>
    %10 = arith.select %7, %5, %9 : vector<8x128xi1>, vector<8x128xf32>
    %11 = arith.truncf %10 : vector<8x128xf32> to vector<8x128xbf16>
    %c0_7 = arith.constant 0 : index
    %c0_8 = arith.constant 0 : index
    %12 = vector.load %arg4[%c0_7, %c0_8] : memref<128x128xbf16, #tpu.memory_space<vmem>>, vector<128x128xbf16>
    %cst_9 = arith.constant dense<0.000000e+00> : vector<8x128xf32>
    %13 = tpu.matmul %11, %12, %cst_9 {dimension_numbers = #tpu.dot_dimension_numbers<[1], [0], [0], [1], [0, 0, 1, 1], [], []>} : vector<8x128xbf16>, vector<128x128xbf16>, vector<8x128xf32> -> vector<8x128xf32>
    %c0_10 = arith.constant 0 : index
    %c0_11 = arith.constant 0 : index
    %14 = vector.load %arg5[%c0_10, %c0_11] : memref<1x128xf32, #tpu.memory_space<vmem>>, vector<1x128xf32>
    %15 = vector.broadcast %14 : vector<1x128xf32> to vector<8x128xf32>
    %16 = arith.addf %13, %15 : vector<8x128xf32>
    %cst_12 = arith.constant 0.000000e+00 : f32
    %17 = vector.broadcast %cst_12 : f32 to vector<8x128xf32>
    %18 = arith.cmpf oge, %16, %17 : vector<8x128xf32>
    %cst_13 = arith.constant 0.00999999977 : f32
    %19 = vector.broadcast %cst_13 : f32 to vector<8x128xf32>
    %20 = arith.mulf %19, %16 : vector<8x128xf32>
    %21 = arith.select %18, %16, %20 : vector<8x128xi1>, vector<8x128xf32>
    %22 = arith.truncf %21 : vector<8x128xf32> to vector<8x128xbf16>
    %c0_14 = arith.constant 0 : index
    %c0_15 = arith.constant 0 : index
    %23 = vector.load %arg6[%c0_14, %c0_15] : memref<128x128xbf16, #tpu.memory_space<vmem>>, vector<128x128xbf16>
    %cst_16 = arith.constant dense<0.000000e+00> : vector<8x128xf32>
    %24 = tpu.matmul %22, %23, %cst_16 {dimension_numbers = #tpu.dot_dimension_numbers<[1], [0], [0], [1], [0, 0, 1, 1], [], []>} : vector<8x128xbf16>, vector<128x128xbf16>, vector<8x128xf32> -> vector<8x128xf32>
    %c0_17 = arith.constant 0 : index
    %c0_18 = arith.constant 0 : index
    %25 = vector.load %arg7[%c0_17, %c0_18] : memref<1x128xf32, #tpu.memory_space<vmem>>, vector<1x128xf32>
    %26 = vector.broadcast %25 : vector<1x128xf32> to vector<8x128xf32>
    %27 = arith.addf %24, %26 : vector<8x128xf32>
    %c0_19 = arith.constant 0 : index
    %c0_20 = arith.constant 0 : index
    %28 = vector.load %arg8[%c0_19, %c0_20] : memref<8x128xf32, #tpu.memory_space<vmem>>, vector<8x128xf32>
    tpu.vector_store %arg8[%c0_19, %c0_20], %27 {strides = array<i32>} : memref<8x128xf32, #tpu.memory_space<vmem>>, vector<8x128xf32>,
    return
  }
  func.func @transform_0(%arg0: i32) -> (i32, i32) {
    %c0_i32 = arith.constant 0 : i32
    %c0_i32_0 = arith.constant 0 : i32
    return %arg0, %c0_i32 : i32, i32
  }
  func.func @transform_1(%arg0: i32) -> (i32, i32) {
    %c0_i32 = arith.constant 0 : i32
    %c0_i32_0 = arith.constant 0 : i32
    %c0_i32_1 = arith.constant 0 : i32
    return %c0_i32, %c0_i32_0 : i32, i32
  }
  func.func @transform_2(%arg0: i32) -> (i32, i32) {
    %c0_i32 = arith.constant 0 : i32
    %c0_i32_0 = arith.constant 0 : i32
    %c0_i32_1 = arith.constant 0 : i32
    return %c0_i32, %c0_i32_0 : i32, i32
  }
  func.func @transform_3(%arg0: i32) -> (i32, i32) {
    %c0_i32 = arith.constant 0 : i32
    %c0_i32_0 = arith.constant 0 : i32
    %c0_i32_1 = arith.constant 0 : i32
    return %c0_i32, %c0_i32_0 : i32, i32
  }
  func.func @transform_4(%arg0: i32) -> (i32, i32) {
    %c0_i32 = arith.constant 0 : i32
    %c0_i32_0 = arith.constant 0 : i32
    %c0_i32_1 = arith.constant 0 : i32
    return %c0_i32, %c0_i32_0 : i32, i32
  }
  func.func @transform_5(%arg0: i32) -> (i32, i32) {
    %c0_i32 = arith.constant 0 : i32
    %c0_i32_0 = arith.constant 0 : i32
    %c0_i32_1 = arith.constant 0 : i32
    return %c0_i32, %c0_i32_0 : i32, i32
  }
  func.func @transform_6(%arg0: i32) -> (i32, i32) {
    %c0_i32 = arith.constant 0 : i32
    %c0_i32_0 = arith.constant 0 : i32
    %c0_i32_1 = arith.constant 0 : i32
    return %c0_i32, %c0_i32_0 : i32, i32
  }
  func.func @transform_7(%arg0: i32) -> (i32, i32) {
    %c0_i32 = arith.constant 0 : i32
    %c0_i32_0 = arith.constant 0 : i32
    return %arg0, %c0_i32 : i32, i32
  }
}

</mosaic_0001>

<bundles_post_ra>
// kernel: mlp_forward.1
= control target key start
LH: loop header
LB: loop body
LE: loop exit
PB: predicated region body
PF: predicated region fallthrough
CT: control target
= control target key end

     0   :  { %v514_v0 = vmov 0.0   ;;  %vm515_vm0 = vmmov 0   ;;  %s673_s1 = inlined_call_operand.vmem [shape: bf16[128,128], index: 1, kind: input, shape index: {}]   ;;  %s674_s3 = inlined_call_operand.vmem [shape: bf16[128,128], index: 3, kind: input, shape index: {}]   ;;  %s675_s0 = inlined_call_operand.vmem [shape: bf16[8,128], index: 0, kind: input, shape index: {}]   ;;  %s676_s5 = inlined_call_operand.vmem [shape: bf16[128,128], index: 5, kind: input, shape index: {}]   ;;  %s677_s2 = inlined_call_operand.vmem [shape: f32[1,128], index: 2, kind: input, shape index: {}]   ;;  %s678_s4 = inlined_call_operand.vmem [shape: f32[1,128], index: 4, kind: input, shape index: {}]   ;;  %s679_s6 = inlined_call_operand.vmem [shape: f32[1,128], index: 6, kind: input, shape index: {}]   ;;  %s680_s7 = inlined_call_operand.vmem [shape: f32[8,128], index: 7, kind: output, shape index: {}]  }
   0x1   :  { %428 = vmatprep.subr.bf16.mxu0 %v514_v0  ;;  %v490_v1 = vld [vmem:[%s673_s1 + $0x38] sm:$0xff]   ;;  %444 = vmatprep.mubr.msk.bf16.mxu0 %vm515_vm0, %v514_v0  ;;  %v491_v2 = vld [vmem:[%s673_s1 + $0x30] sm:$0xff]   ;;  %v492_v3 = vld [vmem:[%s673_s1 + $0x28] sm:$0xff]  }
   0x2   :  { %448 = vmatprep.subr.bf16.mxu1 %v514_v0  ;;  %464 = vmatprep.mubr.msk.bf16.mxu1 %vm515_vm0, %v514_v0  ;;  %v498_v4 = vld [vmem:[%s674_s3 + $0x38] sm:$0xff]   ;;  %v493_v5 = vld [vmem:[%s673_s1 + $0x20] sm:$0xff]   ;;  %v499_v6 = vld [vmem:[%s674_s3 + $0x30] sm:$0xff]  }
   0x3   :  { %429 = vmatpush3.bf16.msra.mxu0 %v490_v1  ;;  %449 = vmatpush3.bf16.msra.mxu1 %v498_v4  ;;  %v494_v7 = vld [vmem:[%s673_s1 + $0x18] sm:$0xff]   ;;  %v500_v8 = vld [vmem:[%s674_s3 + $0x28] sm:$0xff]   ;;  %v495_v9 = vld [vmem:[%s673_s1 + $0x10] sm:$0xff]  }
   0x4   :  { %430 = vmatprep.subr.bf16.mxu0 %v514_v0  ;;  %450 = vmatprep.subr.bf16.mxu1 %v514_v0  ;;  %v501_v10 = vld [vmem:[%s674_s3 + $0x20] sm:$0xff]   ;;  %v496_v11 = vld [vmem:[%s673_s1 + $0x8] sm:$0xff]   ;;  %v502_v12 = vld [vmem:[%s674_s3 + $0x18] sm:$0xff]  }
   0x5   :  { %v497_v13 = vld [vmem:[%s673_s1] sm:$0xff]   ;;  %v503_v14 = vld [vmem:[%s674_s3 + $0x10] sm:$0xff]   ;;  %v504_v16 = vld [vmem:[%s674_s3 + $0x8] sm:$0xff]  }
   0x6   :  { %v27_v15 = vld [vmem:[%s675_s0] sm:$0xf]  ;;  %v506_v18 = vld [vmem:[%s676_s5 + $0x38] sm:$0xff]   ;;  %v507_v19 = vld [vmem:[%s676_s5 + $0x30] sm:$0xff]  }
   0x7   :  { %431 = vmatpush3.bf16.msra.mxu0 %v491_v2  ;;  %451 = vmatpush3.bf16.msra.mxu1 %v499_v6  ;;  %v505_v17 = vld [vmem:[%s674_s3] sm:$0xff]   ;;  %v508_v20 = vld [vmem:[%s676_s5 + $0x28] sm:$0xff]   ;;  %v510_v22 = vld [vmem:[%s676_s5 + $0x18] sm:$0xff]  }
   0x8   :  { %432 = vmatprep.subr.bf16.mxu0 %v514_v0  ;;  %452 = vmatprep.subr.bf16.mxu1 %v514_v0  ;;  %v509_v21 = vld [vmem:[%s676_s5 + $0x20] sm:$0xff]   ;;  %v511_v23 = vld [vmem:[%s676_s5 + $0x10] sm:$0xff]   ;;  %v512_v33 = vld [vmem:[%s676_s5 + $0x8] sm:$0xff]  }
   0x9   :  { %v374_v24 = vld [vmem:[%s677_s2] ss:$0 sm:$0xff] }
   0xa   :  { %v513_v34 = vld [vmem:[%s676_s5] sm:$0xff]  }
   0xb   :  { %433 = vmatpush3.bf16.msra.mxu0 %v492_v3  ;;  %453 = vmatpush3.bf16.msra.mxu1 %v500_v8  ;;  %v383_v35 = vld [vmem:[%s678_s4] ss:$0 sm:$0xff] }
   0xc   :  { %434 = vmatprep.subr.bf16.mxu0 %v514_v0  ;;  %454 = vmatprep.subr.bf16.mxu1 %v514_v0  ;;  %v392_v44 = vld [vmem:[%s679_s6] ss:$0 sm:$0xff] }
   0xf   :  { %435 = vmatpush3.bf16.msra.mxu0 %v493_v5  ;;  %455 = vmatpush3.bf16.msra.mxu1 %v501_v10 }
  0x10   :  { %436 = vmatprep.subr.bf16.mxu0 %v514_v0  ;;  %456 = vmatprep.subr.bf16.mxu1 %v514_v0 }
  0x13   :  { %437 = vmatpush3.bf16.msra.mxu0 %v494_v7  ;;  %457 = vmatpush3.bf16.msra.mxu1 %v502_v12 }
  0x14   :  { %438 = vmatprep.subr.bf16.mxu0 %v514_v0  ;;  %458 = vmatprep.subr.bf16.mxu1 %v514_v0 }
  0x17   :  { %439 = vmatpush3.bf16.msra.mxu0 %v495_v9  ;;  %459 = vmatpush3.bf16.msra.mxu1 %v503_v14 }
  0x18   :  { %440 = vmatprep.subr.bf16.mxu0 %v514_v0  ;;  %460 = vmatprep.subr.bf16.mxu1 %v514_v0 }
  0x1b   :  { %441 = vmatpush3.bf16.msra.mxu0 %v496_v11  ;;  %461 = vmatpush3.bf16.msra.mxu1 %v504_v16 }
  0x1c   :  { %442 = vmatprep.subr.bf16.mxu0 %v514_v0  ;;  %462 = vmatprep.subr.bf16.mxu1 %v514_v0 }
  0x1f   :  { %443 = vmatpush3.bf16.msra.mxu0 %v497_v13  ;;  %463 = vmatpush3.bf16.msra.mxu1 %v505_v17 }
  0x20   :  { %468 = vmatprep.subr.bf16.mxu0 %v514_v0 }
  0x22   :  { %445 = vmatmul.mubr.bf16.vlgmr.msra.gmra.mxu0 %v27_v15 }
  0x23   :  { %484 = vmatprep.mubr.msk.bf16.mxu0 %vm515_vm0, %v514_v0  ;;  %469 = vmatpush3.bf16.msra.mxu0 %v506_v18 }
  0x24   :  { %470 = vmatprep.subr.bf16.mxu0 %v514_v0 }
  0x27   :  { %471 = vmatpush3.bf16.msra.mxu0 %v507_v19 }
  0x28   :  { %472 = vmatprep.subr.bf16.mxu0 %v514_v0 }
  0x2b   :  { %473 = vmatpush3.bf16.msra.mxu0 %v508_v20 }
  0x2c   :  { %474 = vmatprep.subr.bf16.mxu0 %v514_v0 }
  0x2f   :  { %475 = vmatpush3.bf16.msra.mxu0 %v509_v21 }
  0x30   :  { %476 = vmatprep.subr.bf16.mxu0 %v514_v0 }
  0x33   :  { %477 = vmatpush3.bf16.msra.mxu0 %v510_v22 }
  0x34   :  { %478 = vmatprep.subr.bf16.mxu0 %v514_v0 }
  0x37   :  { %479 = vmatpush3.bf16.msra.mxu0 %v511_v23 }
  0x38   :  { %480 = vmatprep.subr.bf16.mxu0 %v514_v0 }
  0x3b   :  { %481 = vmatpush3.bf16.msra.mxu0 %v512_v33 }
  0x3c   :  { %482 = vmatprep.subr.bf16.mxu0 %v514_v0 }
  0x3f   :  { %483 = vmatpush3.bf16.msra.mxu0 %v513_v34 }
  0xe2   :  { %v133_v25 = vpop.f32.mrf.mxu0 }
  0xe3   :  { %v134_v26 = vadd.f32 %v374_v24, %v133_v25 }
  0xe4   :  { %v446_v27 = vpop.f32.mrf.mxu0 }
  0xe5   :  { %vm139_vm1 = vcmp.ge.f32.partialorder %v134_v26, 0.0  ;;  %v140_v28 = vmul.f32 0.01, %v134_v26 }
  0xe6   :  { %v136_v29 = vpop.f32.mrf.mxu0 }
  0xe7   :  { %v141_v30 = vsel %vm139_vm1, %v134_v26, %v140_v28 }
  0xe8   :  { %v447_v31 = vpop.f32.mrf.mxu0  ;;  %v142_v32 = vpack.c.bf16 %v141_v30, %v141_v30 }
  0xea   :  { %465 = vmatmul.mubr.bf16.vlgmr.msra.gmra.mxu1 %v142_v32 }
 0x1aa   :  { %v248_v36 = vpop.f32.mrf.mxu1 }
 0x1ab   :  { %v249_v37 = vadd.f32 %v383_v35, %v248_v36 }
 0x1ac   :  { %v466_v38 = vpop.f32.mrf.mxu1 }
 0x1ad   :  { %vm254_vm2 = vcmp.ge.f32.partialorder %v249_v37, 0.0  ;;  %v255_v39 = vmul.f32 0.01, %v249_v37 }
 0x1ae   :  { %v251_v40 = vpop.f32.mrf.mxu1 }
 0x1af   :  { %v256_v41 = vsel %vm254_vm2, %v249_v37, %v255_v39 }
 0x1b0   :  { %v257_v42 = vpack.c.bf16 %v256_v41, %v256_v41  ;;  %v467_v43 = vpop.f32.mrf.mxu1 }
 0x1b2   :  { %485 = vmatmul.mubr.bf16.vlgmr.msra.gmra.mxu0 %v257_v42 }
 0x272   :  { %v363_v45 = vpop.f32.mrf.mxu0 }
 0x273   :  { %v364_v46 = vadd.f32 %v392_v44, %v363_v45 }
 0x274   :  { %v486_v47 = vpop.f32.mrf.mxu0 }
 0x275   :  { %369 = vst [vmem:[%s680_s7] sm:$0xff] %v364_v46 }
 0x276   :  { %v366_v48 = vpop.f32.mrf.mxu0 }
 0x278   :  { %v487_v49 = vpop.f32.mrf.mxu0 }

</bundles_post_ra>
